<compile_context>
chip_gen: v7x
topology: tpu7x:2x2x1
jax: 0.10.0
libtpu: 0.0.40
codegen_flags: <defaults>
</compile_context>

<pallas_src>
import jax
import jax.numpy as jnp
from jax.experimental import pallas as pl
from jax.experimental.pallas import tpu as pltpu


def _hidden_kernel(a_ref, x_ref, w1_ref, b1_ref, h_ref):
    # (TM, Np) bf16 @ (Np, F) bf16 -> f32 : dominant propagation matmul.
    ax = jnp.dot(a_ref[...], x_ref[...], preferred_element_type=jnp.float32)
    # Small feature transform: bf16 operands, f32 accumulation.
    h = jnp.dot(ax.astype(w1_ref.dtype), w1_ref[...],
                preferred_element_type=jnp.float32) + b1_ref[...]
    h_ref[...] = jnp.maximum(h, 0.0).astype(h_ref.dtype)


def _latent_kernel(a_ref, h_ref, wml_ref, bml_ref, wls_ref, bls_ref, eps_ref,
                   s_ref, z_ref):
    # Single fused propagation for both mu and logstd.
    ah = jnp.dot(a_ref[...], h_ref[...], preferred_element_type=jnp.float32)
    ah = ah.astype(wml_ref.dtype)
    # S lanes: [mu (0:L) | logstd (L:2L) | zero pad].
    s = jnp.dot(ah, wml_ref[...], preferred_element_type=jnp.float32) + bml_ref[...]
    # T lanes: [logstd (0:L) | zero pad]  -> aligned with mu for elementwise z.
    t = jnp.dot(ah, wls_ref[...], preferred_element_type=jnp.float32) + bls_ref[...]
    s_ref[...] = s
    # eps is zero outside lanes [0:L], so padding lanes stay harmless.
    z_ref[...] = s + eps_ref[...] * jnp.exp(t)


def _round_up(x, m):
    return (x + m - 1) // m * m


def vgae_forward(a_hat, x, w1, b1, wmu, bmu, wls, bls, eps, *, tm=128):
    """Returns (z, mu, logstd) for the VGAE forward pass (training semantics)."""
    n, f = x.shape
    hd = w1.shape[1]
    l = wmu.shape[1]
    p = _round_up(2 * l, 128)            # lane-dense fused output width

    tm = min(tm, _round_up(n, 8))        # row tile: multiple of 8 sublanes
    n_pad = _round_up(n, tm)             # node dim padded so tiles divide evenly
    grid = (n_pad // tm,)

    f32, bf16 = jnp.float32, jnp.bfloat16

    # Padded bf16 copies of the big propagation operands (zeros are inert).
    a_p = jnp.zeros((n_pad, n_pad), bf16).at[:n, :n].set(a_hat.astype(bf16))
    x_p = jnp.zeros((n_pad, f), bf16).at[:n, :].set(x.astype(bf16))

    # Fused / lane-padded parameters.
    wml = jnp.zeros((hd, p), bf16).at[:, :2 * l].set(
        jnp.concatenate([wmu, wls], axis=1).astype(bf16))
    bml = jnp.zeros((1, p), f32).at[:, :2 * l].set(
        jnp.concatenate([bmu, bls], axis=1).astype(f32))
    wls0 = jnp.zeros((hd, p), bf16).at[:, :l].set(wls.astype(bf16))
    bls0 = jnp.zeros((1, p), f32).at[:, :l].set(bls.astype(f32))
    eps_p = jnp.zeros((n_pad, p), f32).at[:n, :l].set(eps.astype(f32))

    cparams = pltpu.CompilerParams(
        dimension_semantics=("parallel",),        # row tiles shard across TCs
        vmem_limit_bytes=32 * 1024 * 1024,        # explicit, safe on v5e/v6e/v7x
    )

    # Phase 1: H = relu((A_hat @ X) @ W1 + b1), row-tiled, pipelined.
    h = pl.pallas_call(
        _hidden_kernel,
        out_shape=jax.ShapeDtypeStruct((n_pad, hd), bf16),
        grid=grid,
        in_specs=[
            pl.BlockSpec((tm, n_pad), lambda i: (i, 0)),   # A_hat row tile
            pl.BlockSpec((n_pad, f), lambda i: (0, 0)),    # X (resident)
            pl.BlockSpec((f, hd), lambda i: (0, 0)),       # W1 (resident)
            pl.BlockSpec((1, hd), lambda i: (0, 0)),       # b1 (resident)
        ],
        out_specs=pl.BlockSpec((tm, hd), lambda i: (i, 0)),
        compiler_params=cparams,
    )(a_p, x_p, w1.astype(bf16), b1.astype(f32))

    # Phase 2: fused mu|logstd propagation + in-kernel reparameterization.
    s, z = pl.pallas_call(
        _latent_kernel,
        out_shape=(jax.ShapeDtypeStruct((n_pad, p), f32),
                   jax.ShapeDtypeStruct((n_pad, p), f32)),
        grid=grid,
        in_specs=[
            pl.BlockSpec((tm, n_pad), lambda i: (i, 0)),   # A_hat row tile
            pl.BlockSpec((n_pad, hd), lambda i: (0, 0)),   # H (resident)
            pl.BlockSpec((hd, p), lambda i: (0, 0)),       # [Wmu|Wls|0]
            pl.BlockSpec((1, p), lambda i: (0, 0)),        # [bmu|bls|0]
            pl.BlockSpec((hd, p), lambda i: (0, 0)),       # [Wls|0]
            pl.BlockSpec((1, p), lambda i: (0, 0)),        # [bls|0]
            pl.BlockSpec((tm, p), lambda i: (i, 0)),       # eps row tile
        ],
        out_specs=(pl.BlockSpec((tm, p), lambda i: (i, 0)),
                   pl.BlockSpec((tm, p), lambda i: (i, 0))),
        compiler_params=cparams,
    )(a_p, h, wml, bml, wls0, bls0, eps_p)

    mu = s[:n, :l]
    logstd = s[:n, l:2 * l]
    z_out = z[:n, :l]
    return z_out, mu, logstd


def build_normalized_adjacency(edge_index, num_nodes):
    """Dense D^{-1/2}(A + I_remaining)D^{-1/2}, mirroring GCNConv's gcn_norm."""
    src, dst = edge_index[0], edge_index[1]
    a = jnp.zeros((num_nodes, num_nodes), jnp.float32)
    a = a.at[dst, src].add(1.0)                          # messages flow src -> dst
    diag = jnp.diag(a)
    a = a + jnp.diag(jnp.where(diag > 0.0, 0.0, 1.0))    # add *remaining* self loops
    deg = a.sum(axis=1)
    dinv_sqrt = jnp.where(deg > 0, 1.0 / jnp.sqrt(deg), 0.0)
    return dinv_sqrt[:, None] * a * dinv_sqrt[None, :]


def glorot(key, shape):
    fan_in, fan_out = shape
    limit = jnp.sqrt(6.0 / (fan_in + fan_out))
    return jax.random.uniform(key, shape, jnp.float32, -limit, limit)


if __name__ == "__main__":
    # Small but TPU-friendly shapes (rows fill sublanes, lanes are dense).
    N = 256
    input_dim = 128
    hidden_dim = 128
    latent_dim = 16

    key = jax.random.PRNGKey(0)
    k_x, k_e, k_w1, k_wmu, k_wls, k_eps = jax.random.split(key, 6)

    x = jax.random.normal(k_x, (N, input_dim), jnp.float32)

    # Random undirected edge_index (2, E).
    E_half = 512
    src = jax.random.randint(k_e, (E_half,), 0, N)
    dst = jax.random.randint(jax.random.fold_in(k_e, 1), (E_half,), 0, N)
    edge_index = jnp.stack([jnp.concatenate([src, dst]),
                            jnp.concatenate([dst, src])], axis=0)

    a_hat = build_normalized_adjacency(edge_index, N)

    # Deterministic parameters (glorot weights, zero biases).
    w1 = glorot(k_w1, (input_dim, hidden_dim))
    b1 = jnp.zeros((1, hidden_dim), jnp.float32)
    wmu = glorot(k_wmu, (hidden_dim, latent_dim))
    bmu = jnp.zeros((1, latent_dim), jnp.float32)
    wls = glorot(k_wls, (hidden_dim, latent_dim))
    bls = jnp.zeros((1, latent_dim), jnp.float32)

    # Deterministic eps for the reparameterization trick (training mode).
    eps = jax.random.normal(k_eps, (N, latent_dim), jnp.float32)

    z, mu, logstd = vgae_forward(a_hat, x, w1, b1, wmu, bmu, wls, bls, eps)
    jax.block_until_ready((z, mu, logstd))

    # Pure-JAX reference mirroring the kernel's dtype flow
    # (bf16-quantized matmul operands, f32 accumulation).
    def q(v):
        return v.astype(jnp.bfloat16).astype(jnp.float32)

    ax_ref = q(a_hat) @ q(x)
    h_ref = jnp.maximum(q(ax_ref) @ q(w1) + b1, 0.0)
    ah_ref = q(a_hat) @ q(h_ref)
    mu_ref = q(ah_ref) @ q(wmu) + bmu
    ls_ref = q(ah_ref) @ q(wls) + bls
    z_ref = mu_ref + eps * jnp.exp(ls_ref)

    assert jnp.allclose(mu, mu_ref, atol=2e-2, rtol=2e-2), "mu mismatch"
    assert jnp.allclose(logstd, ls_ref, atol=2e-2, rtol=2e-2), "logstd mismatch"
    assert jnp.allclose(z, z_ref, atol=5e-2, rtol=5e-2), "z mismatch"

    print("KERNEL_OK")
</pallas_src>

<mosaic_0001>
module attributes {stable_mosaic.version = 11 : i64} {
  func.func @_hidden_kernel(%arg0: i32, %arg1: memref<128x256xbf16, #tpu.memory_space<vmem>>, %arg2: memref<256x128xbf16, #tpu.memory_space<vmem>>, %arg3: memref<128x128xbf16, #tpu.memory_space<vmem>>, %arg4: memref<1x128xf32, #tpu.memory_space<vmem>>, %arg5: memref<128x128xbf16, #tpu.memory_space<vmem>>) attributes {dimension_semantics = [#tpu.dimension_semantics<parallel>], iteration_bounds = array<i64: 2>, scalar_prefetch = 0 : i64, scratch_operands = 0 : i64, tpu.core_type = #tpu.core_type<tc>, window_params = [{transform_indices = @transform_0, window_bounds = array<i64: 128, 256>}, {pipeline_mode = #tpu.pipeline_mode<synchronous>, transform_indices = @transform_1, window_bounds = array<i64: 256, 128>}, {pipeline_mode = #tpu.pipeline_mode<synchronous>, transform_indices = @transform_2, window_bounds = array<i64: 128, 128>}, {pipeline_mode = #tpu.pipeline_mode<synchronous>, transform_indices = @transform_3, window_bounds = array<i64: 1, 128>}, {transform_indices = @transform_4, window_bounds = array<i64: 128, 128>}]} {
    %c0 = arith.constant 0 : index
    %c0_0 = arith.constant 0 : index
    %0 = vector.load %arg1[%c0, %c0_0] : memref<128x256xbf16, #tpu.memory_space<vmem>>, vector<128x256xbf16>
    %c0_1 = arith.constant 0 : index
    %c0_2 = arith.constant 0 : index
    %1 = vector.load %arg2[%c0_1, %c0_2] : memref<256x128xbf16, #tpu.memory_space<vmem>>, vector<256x128xbf16>
    %cst = arith.constant dense<0.000000e+00> : vector<128x128xf32>
    %2 = tpu.matmul %0, %1, %cst {dimension_numbers = #tpu.dot_dimension_numbers<[1], [0], [0], [1], [0, 0, 1, 1], [], []>} : vector<128x256xbf16>, vector<256x128xbf16>, vector<128x128xf32> -> vector<128x128xf32>
    %3 = arith.truncf %2 : vector<128x128xf32> to vector<128x128xbf16>
    %c0_3 = arith.constant 0 : index
    %c0_4 = arith.constant 0 : index
    %4 = vector.load %arg3[%c0_3, %c0_4] : memref<128x128xbf16, #tpu.memory_space<vmem>>, vector<128x128xbf16>
    %cst_5 = arith.constant dense<0.000000e+00> : vector<128x128xf32>
    %5 = tpu.matmul %3, %4, %cst_5 {dimension_numbers = #tpu.dot_dimension_numbers<[1], [0], [0], [1], [0, 0, 1, 1], [], []>} : vector<128x128xbf16>, vector<128x128xbf16>, vector<128x128xf32> -> vector<128x128xf32>
    %c0_6 = arith.constant 0 : index
    %c0_7 = arith.constant 0 : index
    %6 = vector.load %arg4[%c0_6, %c0_7] : memref<1x128xf32, #tpu.memory_space<vmem>>, vector<1x128xf32>
    %7 = vector.broadcast %6 : vector<1x128xf32> to vector<128x128xf32>
    %8 = arith.addf %5, %7 : vector<128x128xf32>
    %cst_8 = arith.constant 0.000000e+00 : f32
    %9 = vector.broadcast %cst_8 : f32 to vector<128x128xf32>
    %10 = arith.maximumf %8, %9 : vector<128x128xf32>
    %11 = arith.truncf %10 : vector<128x128xf32> to vector<128x128xbf16>
    %c0_9 = arith.constant 0 : index
    %c0_10 = arith.constant 0 : index
    %12 = vector.load %arg5[%c0_9, %c0_10] : memref<128x128xbf16, #tpu.memory_space<vmem>>, vector<128x128xbf16>
    tpu.vector_store %arg5[%c0_9, %c0_10], %11 {strides = array<i32>} : memref<128x128xbf16, #tpu.memory_space<vmem>>, vector<128x128xbf16>,
    return
  }
  func.func @transform_0(%arg0: i32) -> (i32, i32) {
    %c0_i32 = arith.constant 0 : i32
    %c0_i32_0 = arith.constant 0 : i32
    return %arg0, %c0_i32 : i32, i32
  }
  func.func @transform_1(%arg0: i32) -> (i32, i32) {
    %c0_i32 = arith.constant 0 : i32
    %c0_i32_0 = arith.constant 0 : i32
    %c0_i32_1 = arith.constant 0 : i32
    return %c0_i32, %c0_i32_0 : i32, i32
  }
  func.func @transform_2(%arg0: i32) -> (i32, i32) {
    %c0_i32 = arith.constant 0 : i32
    %c0_i32_0 = arith.constant 0 : i32
    %c0_i32_1 = arith.constant 0 : i32
    return %c0_i32, %c0_i32_0 : i32, i32
  }
  func.func @transform_3(%arg0: i32) -> (i32, i32) {
    %c0_i32 = arith.constant 0 : i32
    %c0_i32_0 = arith.constant 0 : i32
    %c0_i32_1 = arith.constant 0 : i32
    return %c0_i32, %c0_i32_0 : i32, i32
  }
  func.func @transform_4(%arg0: i32) -> (i32, i32) {
    %c0_i32 = arith.constant 0 : i32
    %c0_i32_0 = arith.constant 0 : i32
    return %arg0, %c0_i32 : i32, i32
  }
}

</mosaic_0001>

<bundles_post_ra>
// kernel: tpu_custom_call.1
= control target key start
LH: loop header
LB: loop body
LE: loop exit
PB: predicated region body
PF: predicated region fallthrough
CT: control target
= control target key end

     0   :  { %9 = vsyncpa [#allocation3], 0  ;;  %s1783_s0 = inlined_call_operand.hbm [shape: bf16[256,256], index: 0, kind: input, shape index: {}]   ;;  %s1784_s1 = inlined_call_operand.hbm [shape: bf16[256,128], index: 1, kind: input, shape index: {}]   ;;  %s1785_s2 = inlined_call_operand.hbm [shape: bf16[128,128], index: 2, kind: input, shape index: {}]   ;;  %s1786_s3 = inlined_call_operand.vmem [shape: f32[1,128], index: 3, kind: input, shape index: {}]   ;;  %s1787_s4 = inlined_call_operand.hbm [shape: bf16[256,128], index: 4, kind: output, shape index: {}]  }
   0x1   :  { %11 = vsyncpa [#allocation3 + $0x1], 0 }
   0x2   :  { %12 = vsyncpa [#allocation6], 0 }
   0x3   :  { %13 = vsyncpa [#allocation4], 0 }
   0x4   :  { %15 = vsyncpa [#allocation4 + $0x1], 0  ;;  %s1516_s15 = smov 0   ;;  %s1518_s16 = smov 0  }
   0x5   :  { %s1520_s17 = smov 0   ;;  %s1522_s18 = smov 0  }
   0x6 LB: > { %s1537_s19 = sadd.s32 4294967295, %s1479_s18   ;;  %s948_s20 = sadd.s32 4294967294, %s1479_s18   ;;  %s1479_s18 = sphi %s1522_s18, %s1807_s18   ;;  %s1475_s17 = sphi %s1520_s17, %s1806_s17   ;;  %s1471_s16 = sphi %s1518_s16, %s1805_s16   ;;  %s1467_s15 = sphi %s1516_s15, %s1804_s15  }
   0x7   : > { %p41_p0 = scmp.ne.s32.totalorder %s1471_s16, %s1467_s15  ;;  %p1788_p1 = scmp.eq.s32.totalorder %s1537_s19, 0 }
   0x8   : > { %p134_p3 = scmp.eq.s32.totalorder %s948_s20, 1  ;;  %p949_p5 = scmp.ge.s32.totalorder %s1479_s18, 1 }
   0x9   : > { %p1546_p4 = por %p1788_p1, %p41_p0  ;;  %p141_p7 = scmp.lt.s32.totalorder %s1479_s18, 3 }
   0xa   : > { %p1551_p6 = por %p134_p3, %p41_p0  ;;  %s1481_s24 = smov [#allocation5]  }
   0xb   : > { %s1791_s21 = scalar_select %p1546_p4, 1, 0 }
   0xc   : > { %s1792_s22 = scalar_select %p1551_p6, 1, 0 }
   0xd   : > { %p1556_p8 = pnand %p949_p5, %p141_p7  ;;  %s153_s25 = sshll.u32 %s1481_s24, 4  ;;  %s1560_s25 = int_to_ptr.vmem [resolvable:$true] %s153_s25 }
   0xe   : > { %s1482_s27 = smov [#allocation7]   ;;  %s1323_s5 = scalar_lea.hbm %s1784_s1, 2048 }
   0xf   : > { %p1214_p9 = pneg %p1556_p8  ;;  %s166_s28 = sshll.u32 %s1482_s27, 4  ;;  %s1571_s28 = int_to_ptr.vmem [resolvable:$true] %s166_s28 }
  0x10   : > { %p1324_p12 = scmp.ne.s32.totalorder %s1784_s1, %s1323_s5  ;;  %p1330_p5 = scmp.lt.u32.totalorder %s1323_s5, %s1784_s1 }
  0x11   : > { %p1567_p11 = pnand %p1214_p9, %p1788_p1 }
  0x13   : > { %p1325_p13 = pneg %p1567_p11 }
  0x15   : > { %p1326_p0 = pnand %p1325_p13, %p1324_p12 }
  0x17   : > { %p1327_p3 = pneg %p1326_p0 }
  0x19   : > { %p1332_p7 = pnand %p1330_p5, %p1327_p3 }
  0x1b   : > { %1335 = shalt.err (!%p1332_p7)
}
  0x1c   : > { %s1336_s10 = scalar_lea.vmem %s1560_s25, 2048  ;;  %p1344_p2 = scmp.lt.s32.totalorder %s1560_s25, %s1560_s25 }
  0x1d   : > { %p1337_p9 = scmp.ne.s32.totalorder %s1560_s25, %s1336_s10  ;;  %p1345_p12 = scmp.lt.s32.totalorder %s1336_s10, %s1336_s10 }
  0x1f   : > { %p1339_p10 = pnand %p1337_p9, %p1325_p13  ;;  %p1346_p0 = por %p1345_p12, %p1344_p2 }
  0x21   : > { %p1340_p1 = pneg %p1339_p10 }
  0x23   : > { %p1347_p6 = pnand %p1346_p0, %p1340_p1 }
  0x25   : > { %1350 = shalt.err (!%p1347_p6)
}
  0x26   : > { %s1483_s11 = smov 64   ;;  %s1484_s12 = smov 4  }
  0x27   : > { %1217 = dma.hbm_to_vmem [thread:$0]  (!%p1567_p11), %s1784_s1, 2048, %s1560_s25, [#allocation6], %s1483_s11, %s1483_s11, %s1484_s12  }
  0x28   : > { %s1351_s27 = scalar_lea.hbm %s1785_s2, 1024 }
  0x29   : > { %p1352_p2 = scmp.ne.s32.totalorder %s1785_s2, %s1351_s27  ;;  %p1358_p10 = scmp.lt.u32.totalorder %s1351_s27, %s1785_s2 }
  0x2b   : > { %p1354_p1 = pnand %p1352_p2, %p1325_p13 }
  0x2d   : > { %p1355_p6 = pneg %p1354_p1 }
  0x2f   : > { %p1360_p3 = pnand %p1358_p10, %p1355_p6 }
  0x31   : > { %1363 = shalt.err (!%p1360_p3)
}
  0x32   : > { %s1364_s25 = scalar_lea.vmem %s1571_s28, 1024  ;;  %p1372_p12 = scmp.lt.s32.totalorder %s1571_s28, %s1571_s28 }
  0x33   : > { %p1365_p5 = scmp.ne.s32.totalorder %s1571_s28, %s1364_s25  ;;  %p1373_p0 = scmp.lt.s32.totalorder %s1364_s25, %s1364_s25 }
  0x35   : > { %p1367_p7 = pnand %p1365_p5, %p1325_p13  ;;  %p1374_p2 = por %p1373_p0, %p1372_p12 }
  0x37   : > { %p1368_p9 = pneg %p1367_p7 }
  0x39   : > { %p1375_p1 = pnand %p1374_p2, %p1368_p9 }
  0x3b   : > { %1378 = shalt.err (!%p1375_p1)
}
  0x3c   : > { %1220 = dma.hbm_to_vmem [thread:$0]  (!%p1567_p11), %s1785_s2, 1024, %s1571_s28, [#allocation6], %s1483_s11, %s1483_s11, %s1484_s12  }
  0x3d   : > { %s1626_s9 = sadd.s32 1, %s1479_s18   ;;  %s28_s26 = sadd.s32 1, %s1475_s17 }
  0x3e   : > { %s25_s10 = ssub.s32 %s1479_s18, %s1626_s9  ;;  %p35_p13 = scmp.ne.s32.totalorder %s1475_s17, %s1471_s16 }
  0x3f   : > { %p26_p6 = scmp.eq.s32.totalorder %s25_s10, 0  ;;  %p36_p10 = scmp.eq.s32.totalorder %s1479_s18, 0 }
  0x40   : > { %p1795_p3 = scmp.eq.s32.totalorder %s1537_s19, 1  ;;  %p1231_p7 = scmp.lt.s32.totalorder %s1479_s18, 2 }
  0x41   : > { %s1642_s14 = scalar_select %p26_p6, %s1475_s17, %s28_s26  }
  0x42   : > { %p1636_p5 = por %p1795_p3, %p35_p13  ;;  %p37_p9 = por %p36_p10, %p35_p13 }
  0x43   : > { %s183_s20 = sand.u32 1, %s1475_s17   ;;  %s1025_s28 = sshll.u32 %s1479_s18, 11 }
  0x44   : > { %s1796_s13 = scalar_select %p1636_p5, 1, 0 }
  0x45   : > { %s953_s24 = sshll.u32 %s183_s20, 7  ;;  %s1649_s27 = scalar_lea.hbm %s1783_s0, %s1025_s28 }
  0x46   : > { %s187_s29 = scalar_lea.vmem [#allocation2], %s953_s24  ;;  %p1653_p11 = pnand %p1231_p7, %p37_p9 }
  0x47   : > { %s195_s30 = sshll.u32 %s187_s29, 4  ;;  %s1657_s6 = scalar_lea.sflag [#allocation3], %s183_s20  ;;  %s1651_s30 = int_to_ptr.vmem [resolvable:$true] %s195_s30 }
  0x48   : > { %s1379_s25 = scalar_lea.hbm %s1649_s27, 2048  ;;  %p1381_p0 = pneg %p1653_p11 }
  0x49   : > { %p1380_p12 = scmp.ne.s32.totalorder %s1649_s27, %s1379_s25  ;;  %s1384_s26 = scalar_lea.hbm %s1783_s0, 4096 }
  0x4a   : > { %p1385_p13 = scmp.lt.u32.totalorder %s1649_s27, %s1783_s0  ;;  %p1386_p6 = scmp.lt.u32.totalorder %s1384_s26, %s1379_s25 }
  0x4b   : > { %p1382_p2 = pnand %p1381_p0, %p1380_p12  ;;  %p1388_p3 = scmp.lt.u32.totalorder %s1379_s25, %s1649_s27 }
  0x4c   : > { %p1387_p10 = por %p1386_p6, %p1385_p13 }
  0x4d   : > { %p1383_p1 = pneg %p1382_p2 }
  0x4e   : > { %p1389_p7 = por %p1388_p3, %p1387_p10 }
  0x50   : > { %p1390_p9 = pnand %p1389_p7, %p1383_p1 }
  0x52   : > { %1393 = shalt.err (!%p1390_p9)
}
  0x53   : > { %s1394_s20 = scalar_lea.vmem %s1651_s30, 2048  ;;  %s1485_s28 = smov [#allocation2]  }
  0x54   : > { %p1395_p12 = scmp.ne.s32.totalorder %s1651_s30, %s1394_s20  ;;  %s1399_s11 = sshll.u32 %s1485_s28, 4  ;;  %s1400_s11 = int_to_ptr.vmem [resolvable:$false] %s1399_s11 }
  0x55   : > { %s1401_s12 = scalar_lea.vmem %s1400_s11, 4096  ;;  %p1402_p4 = scmp.lt.s32.totalorder %s1651_s30, %s1400_s11 }
  0x56   : > { %p1397_p2 = pnand %p1395_p12, %p1381_p0  ;;  %p1403_p13 = scmp.lt.s32.totalorder %s1401_s12, %s1394_s20 }
  0x58   : > { %p1398_p5 = pneg %p1397_p2  ;;  %p1404_p6 = por %p1403_p13, %p1402_p4 }
  0x5a   : > { %p1405_p10 = pnand %p1404_p6, %p1398_p5 }
  0x5c   : > { %1408 = shalt.err (!%p1405_p10)
}
  0x5d   : > { %s1486_s29 = smov 128   ;;  %s1487_s25 = smov 8  }
  0x5e   : > { %1224 = dma.hbm_to_vmem [thread:$0]  (!%p1653_p11), %s1649_s27, 2048, %s1651_s30, %s1657_s6, %s1486_s29, %s1486_s29, %s1487_s25  }
  0x5f   : > { %207 = sbr.rel (%p1556_p8) target bundleno = 650 (0x28a), region = 36  ;;  %s1688_s7 = sand.u32 (!%p1556_p8), 1, %s1471_s16  }
  0x60   : > { %s958_s8 = sshll.u32 (!%p1556_p8), %s1688_s7, 7  ;;  %s210_s26 = scalar_lea.sflag (!%p1556_p8), [#allocation3], %s1688_s7 }
  0x61   : > { %s1692_s10 = scalar_lea.vmem (!%p1556_p8), [#allocation2], %s958_s8  ;;  %p1798_p4 = scmp.ne.s32.totalorder (!%p1556_p8), %s1791_s21, 0 }
  0x66   : > { %1454 = dma.done.wait (%p1798_p4), %s210_s26, 2048  }
  0x67   : > { %1456 = vsyncadd (%p1798_p4), %s210_s26, 4294965248  ;;  %p1799_p5 = scmp.eq.s32.totalorder %s1537_s19, 0 }
  0x69   : > { %1458 = dma.done.wait (%p1799_p5), [#allocation6], 3072   ;;  %p1800_p8 = pmov %p1799_p5 }
  0x6a   : > { %v1275_v0 = vld [vmem:[#allocation5 + $0x40] sm:$0xff]   ;;  %v1277_v2 = vld [vmem:[#allocation5 + $0x48] sm:$0xff]   ;;  %v1279_v4 = vld [vmem:[#allocation5 + $0x50] sm:$0xff]   ;;  %s961_s27 = sshll.u32 %s1688_s7, 6  ;;  %s1042_s6 = sshll.u32 %s1537_s19, 10 }
  0x6b   : > { %1460 = vsyncadd (%p1800_p8), [#allocation6], 4294964224  ;;  %v1276_v1 = vld [vmem:[#allocation5] sm:$0xff]   ;;  %1090 = vmatprep.subr.bf16.mxu0 %v1275_v0  ;;  %v1278_v3 = vld [vmem:[#allocation5 + $0x8] sm:$0xff]   ;;  %s1722_s30 = scalar_lea.vmem [#allocation8], %s961_s27  ;;  %s1737_s28 = scalar_lea.hbm %s1787_s4, %s1042_s6 }
  0x6c   : > { %1091 = vmatpush3.bf16.msra.mxu0 %v1276_v1  ;;  %v1280_v5 = vld [vmem:[#allocation5 + $0x10] sm:$0xff]   ;;  %v1281_v6 = vld [vmem:[#allocation5 + $0x58] sm:$0xff]   ;;  %v1283_v8 = vld [vmem:[#allocation5 + $0x60] sm:$0xff]   ;;  %s856_s5 = sshll.u32 %s1722_s30, 4  ;;  %s843_s11 = scalar_lea.sflag [#allocation4], %s1688_s7  ;;  %s1732_s5 = int_to_ptr.vmem [resolvable:$true] %s856_s5 }
  0x6d   : > { %1092 = vmatprep.subr.bf16.mxu0 %v1277_v2  ;;  %v1282_v7 = vld [vmem:[#allocation5 + $0x18] sm:$0xff]   ;;  %v1284_v9 = vld [vmem:[#allocation5 + $0x20] sm:$0xff]   ;;  %v1285_v10 = vld [vmem:[#allocation5 + $0x68] sm:$0xff]   ;;  %s1409_s19 = scalar_lea.vmem %s1732_s5, 1024  ;;  %p1801_p0 = scmp.ne.s32.totalorder %s1796_s13, 0 }
  0x6e   : > { %v1293_v11 = vld [vmem:[%s1692_s10 + $0x4] ss:$8 sps:$4 sm:$0xff]   ;;  %v1287_v13 = vld [vmem:[#allocation5 + $0x70] sm:$0xff]   ;;  %v1289_v15 = vld [vmem:[#allocation5 + $0x78] sm:$0xff]   ;;  %p1410_p11 = scmp.ne.s32.totalorder %s1732_s5, %s1409_s19  ;;  %s1488_s12 = smov [#allocation8]  }
  0x6f   : > { %v1286_v12 = vld [vmem:[#allocation5 + $0x28] sm:$0xff]   ;;  %505 = vmatprep.mubr.bf16.mxu0 %v1293_v11  ;;  %v1288_v14 = vld [vmem:[#allocation5 + $0x30] sm:$0xff]   ;;  %v1290_v16 = vld [vmem:[#allocation5 + $0x38] sm:$0xff]   ;;  %s1413_s29 = sshll.u32 %s1488_s12, 4  ;;  %s1414_s29 = int_to_ptr.vmem [resolvable:$false] %s1413_s29 }
  0x70   : > { %1093 = vmatpush3.bf16.msra.mxu0 %v1278_v3  ;;  %v1315_v17 = vld [vmem:[#allocation7] sm:$0xff]   ;;  %v1316_v19 = vld [vmem:[#allocation7 + $0x8] sm:$0xff]   ;;  %v1294_v20 = vld [vmem:[%s1692_s10 + $0x14] ss:$8 sps:$4 sm:$0xff]   ;;  %p1411_p1 = pnand %p1410_p11, %p1801_p0  ;;  %s1415_s25 = scalar_lea.vmem %s1414_s29, 2048 }
  0x71   : > { %1094 = vmatprep.subr.bf16.mxu0 %v1279_v4  ;;  %v1291_v18 = vld [vmem:[%s1692_s10] ss:$8 sps:$4 sm:$0xff]   ;;  %1170 = vmatprep.subr.bf16.mxu1 %v1315_v17  ;;  %v1317_v21 = vld [vmem:[#allocation7 + $0x10] sm:$0xff]   ;;  %v1318_v22 = vld [vmem:[#allocation7 + $0x18] sm:$0xff]   ;;  %p1416_p7 = scmp.lt.s32.totalorder %s1732_s5, %s1414_s29  ;;  %p1417_p9 = scmp.lt.s32.totalorder %s1415_s25, %s1409_s19 }
  0x72   : > { %1171 = vmatpush3.bf16.msra.mxu1 %v1315_v17  ;;  %v1296_v23 = vld [vmem:[%s1692_s10 + $0x10] ss:$8 sps:$4 sm:$0xff]   ;;  %v1297_v24 = vld [vmem:[%s1692_s10 + $0x24] ss:$8 sps:$4 sm:$0xff]   ;;  %v1299_v25 = vld [vmem:[%s1692_s10 + $0x20] ss:$8 sps:$4 sm:$0xff]   ;;  %p1412_p3 = pneg %p1411_p1 }
  0x73   : > { %1172 = vmatprep.subr.bf16.mxu1 %v1316_v19  ;;  %v1300_v26 = vld [vmem:[%s1692_s10 + $0x34] ss:$8 sps:$4 sm:$0xff]   ;;  %v1302_v27 = vld [vmem:[%s1692_s10 + $0x30] ss:$8 sps:$4 sm:$0xff]   ;;  %v1303_v28 = vld [vmem:[%s1692_s10 + $0x44] ss:$8 sps:$4 sm:$0xff]   ;;  %p1418_p12 = por %p1417_p9, %p1416_p7 }
  0x74   : > { %1095 = vmatpush3.bf16.msra.mxu0 %v1280_v5  ;;  %v1305_v29 = vld [vmem:[%s1692_s10 + $0x40] ss:$8 sps:$4 sm:$0xff]   ;;  %v1306_v30 = vld [vmem:[%s1692_s10 + $0x54] ss:$8 sps:$4 sm:$0xff]   ;;  %v1308_v31 = vld [vmem:[%s1692_s10 + $0x50] ss:$8 sps:$4 sm:$0xff]  }
  0x75   : > { %1096 = vmatprep.subr.bf16.mxu0 %v1281_v6  ;;  %v1309_v32 = vld [vmem:[%s1692_s10 + $0x64] ss:$8 sps:$4 sm:$0xff]   ;;  %v1311_v33 = vld [vmem:[%s1692_s10 + $0x60] ss:$8 sps:$4 sm:$0xff]   ;;  %v1312_v34 = vld [vmem:[%s1692_s10 + $0x74] ss:$8 sps:$4 sm:$0xff]   ;;  %p1419_p2 = pnand %p1418_p12, %p1412_p3 }
  0x76   : > { %1173 = vmatpush3.bf16.msra.mxu1 %v1316_v19  ;;  %v1314_v35 = vld [vmem:[%s1692_s10 + $0x70] ss:$8 sps:$4 sm:$0xff]   ;;  %v1319_v36 = vld [vmem:[#allocation7 + $0x20] sm:$0xff]   ;;  %v1320_v37 = vld [vmem:[#allocation7 + $0x28] sm:$0xff]  }
  0x77   : > { %1174 = vmatprep.subr.bf16.mxu1 %v1317_v21  ;;  %v1321_v38 = vld [vmem:[#allocation7 + $0x30] sm:$0xff]   ;;  %v1322_v39 = vld [vmem:[#allocation7 + $0x38] sm:$0xff]  }
  0x78   : > { %1097 = vmatpush3.bf16.msra.mxu0 %v1282_v7 }
  0x79   : > { %1098 = vmatprep.subr.bf16.mxu0 %v1283_v8 }
  0x7a   : > { %1175 = vmatpush3.bf16.msra.mxu1 %v1317_v21 }
  0x7b   : > { %1176 = vmatprep.subr.bf16.mxu1 %v1318_v22 }
  0x7c   : > { %1099 = vmatpush3.bf16.msra.mxu0 %v1284_v9 }
  0x7d   : > { %1100 = vmatprep.subr.bf16.mxu0 %v1285_v10 }
  0x7e   : > { %1177 = vmatpush3.bf16.msra.mxu1 %v1318_v22 }
  0x7f   : > { %1178 = vmatprep.subr.bf16.mxu1 %v1319_v36 }
  0x80   : > { %1101 = vmatpush3.bf16.msra.mxu0 %v1286_v12 }
  0x81   : > { %1102 = vmatprep.subr.bf16.mxu0 %v1287_v13 }
  0x82   : > { %1179 = vmatpush3.bf16.msra.mxu1 %v1319_v36 }
  0x83   : > { %1180 = vmatprep.subr.bf16.mxu1 %v1320_v37 }
  0x84   : > { %1103 = vmatpush3.bf16.msra.mxu0 %v1288_v14 }
  0x85   : > { %1104 = vmatprep.subr.bf16.mxu0 %v1289_v15 }
  0x86   : > { %1181 = vmatpush3.bf16.msra.mxu1 %v1320_v37 }
  0x87   : > { %1182 = vmatprep.subr.bf16.mxu1 %v1321_v38 }
  0x88   : > { %1105 = vmatpush3.bf16.msra.mxu0 %v1290_v16 }
  0x8a   : > { %1183 = vmatpush3.bf16.msra.mxu1 %v1321_v38 }
  0x8b   : > { %506 = vmatmul.mubr.bf16.vlgmr.msra.gmra.mrb[0].mxu0 %v1291_v18  ;;  %1184 = vmatprep.subr.bf16.mxu1 %v1322_v39 }
  0x8c   : > { %513 = vmatprep.mubr.bf16.mxu0 %v1294_v20 }
  0x8e   : > { %1185 = vmatpush3.bf16.msra.mxu1 %v1322_v39 }
  0x93   : > { %514 = vmatmul.mubr.bf16.gmra.mrb[4].mxu0 %v1296_v23 }
  0x94   : > { %521 = vmatprep.mubr.bf16.mxu0 %v1297_v24 }
  0x9b   : > { %522 = vmatmul.mubr.bf16.gmra.mrb[8].mxu0 %v1299_v25 }
  0x9c   : > { %529 = vmatprep.mubr.bf16.mxu0 %v1300_v26 }
  0xa3   : > { %530 = vmatmul.mubr.bf16.gmra.mrb[12].mxu0 %v1302_v27 }
  0xa4   : > { %537 = vmatprep.mubr.bf16.mxu0 %v1303_v28 }
  0xab   : > { %538 = vmatmul.mubr.bf16.gmra.mrb[16].mxu0 %v1305_v29 }
  0xac   : > { %545 = vmatprep.mubr.bf16.mxu0 %v1306_v30 }
  0xb3   : > { %546 = vmatmul.mubr.bf16.gmra.mrb[20].mxu0 %v1308_v31 }
  0xb4   : > { %553 = vmatprep.mubr.bf16.mxu0 %v1309_v32  ;;  %v994_v32 = vld [vmem:[%s1786_s3] ss:$0 sm:$0xff] }
  0xbb   : > { %554 = vmatmul.mubr.bf16.gmra.mrb[24].mxu0 %v1311_v33 }
  0xbc   : > { %561 = vmatprep.mubr.bf16.mxu0 %v1312_v34 }
  0xc3   : > { %562 = vmatmul.mubr.bf16.gmra.mrb[28].mxu0 %v1314_v35 }
 0x15e   : > { %v1106_v40 = vpop.f32.mrb[0].mxu0 }
 0x15f   : > { %v1107_v41 = vpop.f32.mrb[1].mxu0 }
 0x160   : > { %v1108_v42 = vadd.f32 %v1107_v41, %v1106_v40  ;;  %v1109_v43 = vpop.f32.mrb[2].mxu0 }
 0x161   : > { %v1110_v44 = vpop.f32.mrb[3].mxu0 }
 0x162   : > { %v1111_v45 = vadd.f32 %v1110_v44, %v1109_v43 }
 0x164   : > { %v570_v46 = vpack.c.bf16 %v1111_v45, %v1108_v42 }
 0x166   : > { %v1112_v47 = vpop.f32.mrb[4].mxu0  ;;  %1186 = vmatprep.mubr.bf16.mxu1 %v570_v46 }
 0x167   : > { %v1113_v48 = vpop.f32.mrb[5].mxu0 }
 0x168   : > { %v1114_v49 = vadd.f32 %v1113_v48, %v1112_v47  ;;  %v1115_v50 = vpop.f32.mrb[6].mxu0 }
 0x169   : > { %v1116_v51 = vpop.f32.mrb[7].mxu0 }
 0x16a   : > { %v1117_v52 = vadd.f32 %v1116_v51, %v1115_v50 }
 0x16c   : > { %v571_v53 = vpack.c.bf16 %v1117_v52, %v1114_v49 }
 0x16e   : > { %v1118_v54 = vpop.f32.mrb[8].mxu0  ;;  %1187 = vmatmul.mubr.bf16.vlgmr.msra.gmra.mrb[0].mxu1 %v571_v53 }
 0x16f   : > { %v1119_v55 = vpop.f32.mrb[9].mxu0 }
 0x170   : > { %v1120_v56 = vadd.f32 %v1119_v55, %v1118_v54  ;;  %v1121_v57 = vpop.f32.mrb[10].mxu0 }
 0x171   : > { %v1122_v58 = vpop.f32.mrb[11].mxu0 }
 0x172   : > { %v1123_v59 = vadd.f32 %v1122_v58, %v1121_v57 }
 0x174   : > { %v572_v60 = vpack.c.bf16 %v1123_v59, %v1120_v56 }
 0x176   : > { %v1124_v61 = vpop.f32.mrb[12].mxu0  ;;  %1190 = vmatprep.mubr.bf16.mxu1 %v572_v60 }
 0x177   : > { %v1125_v62 = vpop.f32.mrb[13].mxu0 }
 0x178   : > { %v1126_v63 = vadd.f32 %v1125_v62, %v1124_v61  ;;  %v1127_v0 = vpop.f32.mrb[14].mxu0 }
 0x179   : > { %v1128_v1 = vpop.f32.mrb[15].mxu0 }
 0x17a   : > { %v1129_v2 = vadd.f32 %v1128_v1, %v1127_v0 }
 0x17c   : > { %v573_v3 = vpack.c.bf16 %v1129_v2, %v1126_v63 }
 0x17e   : > { %v1130_v4 = vpop.f32.mrb[16].mxu0  ;;  %1191 = vmatmul.mubr.bf16.gmra.mrb[4].mxu1 %v573_v3 }
 0x17f   : > { %v1131_v5 = vpop.f32.mrb[17].mxu0 }
 0x180   : > { %v1132_v6 = vadd.f32 %v1131_v5, %v1130_v4  ;;  %v1133_v7 = vpop.f32.mrb[18].mxu0 }
 0x181   : > { %v1134_v8 = vpop.f32.mrb[19].mxu0 }
 0x182   : > { %v1135_v9 = vadd.f32 %v1134_v8, %v1133_v7 }
 0x184   : > { %v574_v10 = vpack.c.bf16 %v1135_v9, %v1132_v6 }
 0x186   : > { %v1136_v11 = vpop.f32.mrb[20].mxu0  ;;  %1194 = vmatprep.mubr.bf16.mxu1 %v574_v10 }
 0x187   : > { %v1137_v12 = vpop.f32.mrb[21].mxu0 }
 0x188   : > { %v1138_v13 = vadd.f32 %v1137_v12, %v1136_v11  ;;  %v1139_v14 = vpop.f32.mrb[22].mxu0 }
 0x189   : > { %v1140_v15 = vpop.f32.mrb[23].mxu0 }
 0x18a   : > { %v1141_v16 = vadd.f32 %v1140_v15, %v1139_v14 }
 0x18c   : > { %v575_v17 = vpack.c.bf16 %v1141_v16, %v1138_v13 }
 0x18e   : > { %v1142_v18 = vpop.f32.mrb[24].mxu0  ;;  %1195 = vmatmul.mubr.bf16.gmra.mrb[8].mxu1 %v575_v17 }
 0x18f   : > { %v1143_v19 = vpop.f32.mrb[25].mxu0 }
 0x190   : > { %v1144_v20 = vadd.f32 %v1143_v19, %v1142_v18  ;;  %v1145_v21 = vpop.f32.mrb[26].mxu0 }
 0x191   : > { %v1146_v22 = vpop.f32.mrb[27].mxu0 }
 0x192   : > { %v1147_v23 = vadd.f32 %v1146_v22, %v1145_v21 }
 0x194   : > { %v576_v24 = vpack.c.bf16 %v1147_v23, %v1144_v20 }
 0x196   : > { %v1148_v25 = vpop.f32.mrb[28].mxu0  ;;  %1198 = vmatprep.mubr.bf16.mxu1 %v576_v24 }
 0x197   : > { %v1149_v26 = vpop.f32.mrb[29].mxu0 }
 0x198   : > { %v1150_v27 = vadd.f32 %v1149_v26, %v1148_v25  ;;  %v1151_v28 = vpop.f32.mrb[30].mxu0 }
 0x199   : > { %v1152_v29 = vpop.f32.mrb[31].mxu0 }
 0x19a   : > { %v1153_v30 = vadd.f32 %v1152_v29, %v1151_v28 }
 0x19c   : > { %v577_v31 = vpack.c.bf16 %v1153_v30, %v1150_v27 }
 0x19e   : > { %1199 = vmatmul.mubr.bf16.gmra.mrb[12].mxu1 %v577_v31 }
 0x241   : > { %v1188_v33 = vpop.f32.mrb[0].mxu1 }
 0x242   : > { %v692_v34 = vadd.f32 %v1188_v33, %v994_v32  ;;  %v683_v35 = vpop.f32.mrb[1].mxu1 }
 0x243   : > { %v684_v36 = vadd.f32 %v994_v32, %v683_v35  ;;  %v1189_v37 = vpop.f32.mrb[2].mxu1 }
 0x244   : > { %v695_v38 = vadd.f32 %v1189_v37, %v994_v32  ;;  %v686_v39 = vpop.f32.mrb[3].mxu1  ;;  %v748_v41 = vmax.f32 %v692_v34, 0.0 }
 0x245   : > { %v687_v40 = vadd.f32 %v994_v32, %v686_v39  ;;  %v746_v43 = vmax.f32 %v684_v36, 0.0 }
 0x246   : > { %v749_v42 = vmax.f32 %v695_v38, 0.0 }
 0x247   : > { %v747_v44 = vmax.f32 %v687_v40, 0.0 }
 0x248   : > { %v1051_v45 = vpack.c.bf16 %v749_v42, %v748_v41 }
 0x249   : > { %v1046_v46 = vpack.c.bf16 %v747_v44, %v746_v43 }
 0x24a   : > { %1083 = vst [vmem:[%s1722_s30 + $0x8] sm:$0xff] %v1051_v45  }
 0x24b   : > { %1047 = vst [vmem:[%s1722_s30] sm:$0xff] %v1046_v46  }
 0x251   : > { %v1192_v47 = vpop.f32.mrb[4].mxu1 }
 0x252   : > { %v708_v48 = vadd.f32 %v1192_v47, %v994_v32  ;;  %v699_v49 = vpop.f32.mrb[5].mxu1 }
 0x253   : > { %v700_v50 = vadd.f32 %v994_v32, %v699_v49  ;;  %v1193_v51 = vpop.f32.mrb[6].mxu1 }
 0x254   : > { %v711_v52 = vadd.f32 %v1193_v51, %v994_v32  ;;  %v702_v53 = vpop.f32.mrb[7].mxu1  ;;  %v752_v55 = vmax.f32 %v708_v48, 0.0 }
 0x255   : > { %v703_v54 = vadd.f32 %v994_v32, %v702_v53  ;;  %v750_v57 = vmax.f32 %v700_v50, 0.0 }
 0x256   : > { %v753_v56 = vmax.f32 %v711_v52, 0.0 }
 0x257   : > { %v751_v58 = vmax.f32 %v703_v54, 0.0 }
 0x258   : > { %v1061_v59 = vpack.c.bf16 %v753_v56, %v752_v55 }
 0x259   : > { %v1056_v60 = vpack.c.bf16 %v751_v58, %v750_v57 }
 0x25a   : > { %1085 = vst [vmem:[%s1722_s30 + $0x18] sm:$0xff] %v1061_v59  }
 0x25b   : > { %1084 = vst [vmem:[%s1722_s30 + $0x10] sm:$0xff] %v1056_v60  }
 0x261   : > { %v1196_v61 = vpop.f32.mrb[8].mxu1 }
 0x262   : > { %v724_v62 = vadd.f32 %v1196_v61, %v994_v32  ;;  %v715_v63 = vpop.f32.mrb[9].mxu1 }
 0x263   : > { %v716_v0 = vadd.f32 %v994_v32, %v715_v63  ;;  %v1197_v1 = vpop.f32.mrb[10].mxu1 }
 0x264   : > { %v727_v2 = vadd.f32 %v1197_v1, %v994_v32  ;;  %v718_v3 = vpop.f32.mrb[11].mxu1  ;;  %v756_v5 = vmax.f32 %v724_v62, 0.0 }
 0x265   : > { %v719_v4 = vadd.f32 %v994_v32, %v718_v3  ;;  %v754_v7 = vmax.f32 %v716_v0, 0.0 }
 0x266   : > { %v757_v6 = vmax.f32 %v727_v2, 0.0 }
 0x267   : > { %v755_v8 = vmax.f32 %v719_v4, 0.0 }
 0x268   : > { %v1071_v9 = vpack.c.bf16 %v757_v6, %v756_v5 }
 0x269   : > { %v1066_v10 = vpack.c.bf16 %v755_v8, %v754_v7 }
 0x26a   : > { %1087 = vst [vmem:[%s1722_s30 + $0x28] sm:$0xff] %v1071_v9  }
 0x26b   : > { %1086 = vst [vmem:[%s1722_s30 + $0x20] sm:$0xff] %v1066_v10  }
 0x271   : > { %v1200_v11 = vpop.f32.mrb[12].mxu1 }
 0x272   : > { %v740_v12 = vadd.f32 %v1200_v11, %v994_v32  ;;  %v731_v13 = vpop.f32.mrb[13].mxu1 }
 0x273   : > { %v732_v14 = vadd.f32 %v994_v32, %v731_v13  ;;  %v1201_v15 = vpop.f32.mrb[14].mxu1 }
 0x274   : > { %v743_v16 = vadd.f32 %v1201_v15, %v994_v32  ;;  %v734_v17 = vpop.f32.mrb[15].mxu1  ;;  %v760_v19 = vmax.f32 %v740_v12, 0.0 }
 0x275   : > { %v735_v18 = vadd.f32 %v994_v32, %v734_v17  ;;  %v758_v21 = vmax.f32 %v732_v14, 0.0 }
 0x276   : > { %v761_v20 = vmax.f32 %v743_v16, 0.0 }
 0x277   : > { %v759_v22 = vmax.f32 %v735_v18, 0.0 }
 0x278   : > { %v1081_v23 = vpack.c.bf16 %v761_v20, %v760_v19 }
 0x279   : > { %v1076_v24 = vpack.c.bf16 %v759_v22, %v758_v21 }
 0x27a   : > { %1089 = vst [vmem:[%s1722_s30 + $0x38] sm:$0xff] %v1081_v23  }
 0x27b   : > { %1088 = vst [vmem:[%s1722_s30 + $0x30] sm:$0xff] %v1076_v24  }
 0x27c   : > { %1422 = shalt.err (!%p1419_p2)
}
 0x27d   : > { %s1423_s8 = scalar_lea.hbm %s1737_s28, 1024  ;;  %s1427_s21 = scalar_lea.hbm %s1787_s4, 2048 }
 0x27e   : > { %p1424_p13 = scmp.ne.s32.totalorder %s1737_s28, %s1423_s8  ;;  %p1428_p4 = scmp.lt.u32.totalorder %s1737_s28, %s1787_s4 }
 0x27f   : > { %p1429_p5 = scmp.lt.u32.totalorder %s1427_s21, %s1423_s8  ;;  %p1431_p11 = scmp.lt.u32.totalorder %s1423_s8, %s1737_s28 }
 0x280   : > { %p1425_p6 = pnand %p1424_p13, %p1801_p0 }
 0x281   : > { %p1430_p8 = por %p1429_p5, %p1428_p4 }
 0x282   : > { %p1426_p10 = pneg %p1425_p6 }
 0x283   : > { %p1432_p1 = por %p1431_p11, %p1430_p8 }
 0x285   : > { %p1433_p3 = pnand %p1432_p1, %p1426_p10 }
 0x287   : > { %1436 = shalt.err (!%p1433_p3)
}
 0x288   : > { %s1489_s30 = smov 64   ;;  %s1490_s6 = smov 4  }
 0x289   : > { %1212 = dma.vmem_to_hbm [thread:$0]  (%p1801_p0), %s1732_s5, 1024, %s1737_s28, %s843_s11, %s1489_s30, %s1489_s30, %s1490_s6  }
 0x28a PF: > { %s871_s24 = sand.u32 1, %s1467_s15   ;;  %p1802_p7 = scmp.ne.s32.totalorder %s1792_s22, 0 }
 0x28b   : > { %p1803_p9 = scmp.ge.s32.totalorder %s1479_s18, 2  ;;  %s872_s20 = scalar_lea.sflag [#allocation4], %s871_s24 }
 0x28d   : > { %p1226_p12 = pnand %p1803_p9, %p1802_p7 }
 0x28f   : > { %1462 = dma.done.wait (!%p1226_p12), %s872_s20, 1024  }
 0x290   : > { %1464 = vsyncadd (!%p1226_p12), %s872_s20, 4294966272  ;;  %p18_p2 = scmp.ge.s32.totalorder %s1626_s9, 4   ;;  %s1804_s15 = smov %s1471_s16 }
 0x291   : > { %s1805_s16 = smov %s1475_s17  ;;  %s1806_s17 = smov %s1642_s14 }
 0x292   : > { %s1807_s18 = smov %s1626_s9  ;;  %20 = sbr.rel (!%p18_p2) target bundleno = 6 (0x6), region = 89 }
 0x299   :  { %877 = vsyncpa [#allocation3], 1 }
 0x29a   :  { %879 = vsyncpa [#allocation3 + $0x1], 1 }
 0x29b   :  { %880 = vsyncpa [#allocation6], 1 }
 0x29c   :  { %881 = vsyncpa [#allocation4], 1 }
 0x29d   :  { %883 = vsyncpa [#allocation4 + $0x1], 1 }

</bundles_post_ra>
